<compile_context>
chip_gen: v5e
topology: v5e:2x2
jax: 0.10.0
libtpu: 0.0.40
codegen_flags: <defaults>
</compile_context>

<pallas_src>
import jax
import jax.numpy as jnp
from jax.experimental import pallas as pl
from jax.experimental.pallas import tpu as pltpu

_NUM_LEVELS = 6
_TINY_W = 4   # widths <= this (wo <= 2) use the trivially-unrolled lane path


def _out_len(n):
    # torch.nn.MaxPool2d(3, stride=2, padding=1) output length.
    return (n - 1) // 2 + 1


def _level_shapes(H, W):
    shapes, h, w = [], H, W
    for _ in range(_NUM_LEVELS):
        h, w = _out_len(h), _out_len(w)
        shapes.append((h, w))
    return shapes


def _round_up(n, m):
    return ((n + m - 1) // m) * m


def _neg(dtype):
    dtype = jnp.dtype(dtype)
    if jnp.issubdtype(dtype, jnp.floating):
        return -jnp.inf
    return jnp.iinfo(dtype).min


def _pool_sublane(src_ref, n_rows, n_cols, dtype):
    """k=3 / s=2 / p=1 max pool along dim 1 (sublanes) of src_ref[:, :n_rows, :n_cols].

    src_ref is a rank-3 VMEM ref with a leading block_b dim; returns a
    (block_b, out_len(n_rows), n_cols) value.  3-phase form:
        out[j] = max(x[2j], x[2j+1], x[2j-1])   (missing neighbors padded with -inf)
    built from two stride-2 sublane loads and two full-tile maxes (no per-row unroll).
    """
    n_out = _out_len(n_rows)
    cols = slice(0, n_cols)
    if n_rows == 1:
        return src_ref[:, 0:1, cols]
    if n_rows == 2:
        return jnp.maximum(src_ref[:, 0:1, cols], src_ref[:, 1:2, cols])

    n_fwd = n_rows // 2                                         # number of valid rows 2j+1
    even = src_ref[:, pl.ds(0, n_out, stride=2), cols]          # x[2j]
    fwd = src_ref[:, pl.ds(1, n_fwd, stride=2), cols]           # x[2j+1]
    bb = even.shape[0]
    neg = jnp.full((bb, 1, n_cols), _neg(dtype), dtype)
    fwd_full = fwd if n_fwd == n_out else jnp.concatenate([fwd, neg], axis=1)
    out = jnp.maximum(even, fwd_full)
    back = jnp.concatenate([neg, fwd_full[:, : n_out - 1, :]], axis=1)   # x[2j-1]
    return jnp.maximum(out, back)


def _pool_lane(v, tmp_ref, n_cols, dtype):
    """k=3 / s=2 / p=1 max pool along dim 2 (lanes) of the (block_b, r, n_cols) value v."""
    bb, r, _ = v.shape
    n_out = _out_len(n_cols)
    if n_cols == 1:
        return v
    if n_cols <= _TINY_W:
        # Tiny widths: at most 2 output columns -> direct lane slices are cheapest/safest.
        cols = []
        for j in range(n_out):
            lo, hi = max(2 * j - 1, 0), min(2 * j + 2, n_cols)
            c = v[:, :, lo:lo + 1]
            for k in range(lo + 1, hi):
                c = jnp.maximum(c, v[:, :, k:k + 1])
            cols.append(c)
        return cols[0] if n_out == 1 else jnp.concatenate(cols, axis=2)
    # General path: one XLU transpose into the tile-aligned scratch, reuse the 3-phase
    # sublane pooling (stride-2 ref loads), transpose back.
    tmp_ref[:, 0:n_cols, 0:r] = jnp.swapaxes(v, 1, 2)           # (bb, n_cols, r)
    pooled_t = _pool_sublane(tmp_ref, n_cols, r, dtype)         # (bb, n_out, r)
    return jnp.swapaxes(pooled_t, 1, 2)                         # (bb, r, n_out)


def _make_kernel(H, W, level_shapes, dtype):
    def kernel(x_ref, o1, o2, o3, o4, o5, o6, tmp_ref):
        outs = (o1, o2, o3, o4, o5, o6)
        src, h, w = x_ref, H, W
        for o_ref, (ho, wo) in zip(outs, level_shapes):
            hp = _pool_sublane(src, h, w, dtype)        # (block_b, ho, w)
            out = _pool_lane(hp, tmp_ref, w, dtype)     # (block_b, ho, wo)
            o_ref[...] = out.astype(dtype)              # one dense store per level
            src, h, w = o_ref, ho, wo                   # next level reads this VMEM output
    return kernel


def _vmem_limit_bytes():
    cap = 64 * 1024 * 1024          # safe fallback: fits every generation (v7x: 64 MiB / TC)
    try:
        info = pltpu.get_tpu_info()
        cap = int(getattr(info, "vmem_capacity_bytes", cap))
    except Exception:
        pass
    # <= ~48 MiB on v7x (64 MiB physical), up to 96 MiB on v5e / v6e (128 MiB physical).
    return int(min(96 * 1024 * 1024, (cap * 3) // 4))


def _scratch_dims(H, W, itemsize):
    # Largest transposed plane is level 1: (W, out_len(H)).  Pad to hardware tiles so the
    # transpose store stays dense (sublanes -> 8 / 16 for 16-bit dtypes, lanes -> 128).
    sub = 16 if itemsize < 4 else 8
    rows = _round_up(max(W, 1), sub)
    cols = _round_up(max(_out_len(H), 1), 128)
    return rows, cols


def _pick_block_b(B, H, W, itemsize, vmem_limit):
    """Planes per grid step: fill the scoped-VMEM budget (amortize per-step overhead, make
    the level DMAs large and dense) while keeping >= 2 grid steps when possible."""
    shapes = _level_shapes(H, W)
    io_bytes = (H * W + sum(h * w for h, w in shapes)) * itemsize   # input + 6 outs / plane
    srows, scols = _scratch_dims(H, W, itemsize)
    scratch_bytes = srows * scols * itemsize if W > _TINY_W else 0
    per_plane = 2 * io_bytes + scratch_bytes                        # double-buffered I/O
    budget = max(vmem_limit // 2, per_plane)
    cap = int(max(1, min(budget // per_plane, B, 1024)))
    bb = 1
    for d in range(1, cap + 1):
        if B % d == 0:
            bb = d
    if B // bb < 2:                 # keep >= 2 grid steps (pipeline overlap / megacore)
        for d in range(bb - 1, 0, -1):
            if B % d == 0 and B // d >= 2:
                bb = d
                break
    return bb


@jax.jit
def supply_mask_to_transform(inputs):
    """Forward pass of SupplyMaskToTransform: returns (mask1, ..., mask6) for NCHW input."""
    N, C, H, W = inputs.shape
    B = N * C
    dtype = inputs.dtype
    itemsize = jnp.dtype(dtype).itemsize
    shapes = _level_shapes(H, W)
    vmem_limit = _vmem_limit_bytes()
    block_b = _pick_block_b(B, H, W, itemsize, vmem_limit)
    srows, scols = _scratch_dims(H, W, itemsize)
    planes = inputs.reshape(B, H, W)

    out_elems = B * sum(h * w for h, w in shapes)
    cost = pl.CostEstimate(
        flops=8 * out_elems,                                   # a handful of maxes / output
        transcendentals=0,
        bytes_accessed=(B * H * W + out_elems) * itemsize,
    )

    outs = pl.pallas_call(
        _make_kernel(H, W, shapes, dtype),
        out_shape=tuple(jax.ShapeDtypeStruct((B, h, w), dtype) for h, w in shapes),
        grid_spec=pltpu.PrefetchScalarGridSpec(
            num_scalar_prefetch=0,
            grid=(B // block_b,),
            in_specs=[pl.BlockSpec((block_b, H, W), lambda i: (i, 0, 0))],
            out_specs=tuple(
                pl.BlockSpec((block_b, h, w), lambda i: (i, 0, 0)) for h, w in shapes
            ),
            scratch_shapes=[pltpu.VMEM((block_b, srows, scols), dtype)],
        ),
        compiler_params=pltpu.CompilerParams(
            dimension_semantics=("parallel",),
            vmem_limit_bytes=vmem_limit,
        ),
        cost_estimate=cost,
    )(planes)
    return tuple(o.reshape(N, C, h, w) for o, (h, w) in zip(outs, shapes))


def _ref_pool(x):
    # Pure-JAX reference identical to torch MaxPool2d(3, stride=2, padding=1).
    return jax.lax.reduce_window(
        x, -jnp.inf, jax.lax.max,
        window_dimensions=(1, 1, 3, 3),
        window_strides=(1, 1, 2, 2),
        padding=((0, 0), (0, 0), (1, 1), (1, 1)),
    )


if __name__ == "__main__":
    key = jax.random.PRNGKey(0)
    x = jax.random.normal(key, (2, 4, 16, 16), dtype=jnp.float32)

    masks = jax.block_until_ready(supply_mask_to_transform(x))

    ref = x
    for i, m in enumerate(masks):
        ref = _ref_pool(ref)
        assert m.shape == ref.shape, (i, m.shape, ref.shape)
        assert jnp.allclose(m, ref), f"mismatch at mask{i + 1}"

    print("KERNEL_OK")
</pallas_src>

<mosaic_0001>
module attributes {stable_mosaic.version = 11 : i64} {
  func.func @kernel(%arg0: i32, %arg1: memref<4x16x16xf32, #tpu.memory_space<vmem>>, %arg2: memref<4x8x8xf32, #tpu.memory_space<vmem>>, %arg3: memref<4x4x4xf32, #tpu.memory_space<vmem>>, %arg4: memref<4x2x2xf32, #tpu.memory_space<vmem>>, %arg5: memref<4x1x1xf32, #tpu.memory_space<vmem>>, %arg6: memref<4x1x1xf32, #tpu.memory_space<vmem>>, %arg7: memref<4x1x1xf32, #tpu.memory_space<vmem>>, %arg8: memref<4x16x128xf32, #tpu.memory_space<vmem>>) attributes {dimension_semantics = [#tpu.dimension_semantics<parallel>], iteration_bounds = array<i64: 2>, scalar_prefetch = 0 : i64, scratch_operands = 1 : i64, tpu.core_type = #tpu.core_type<tc>, window_params = [{transform_indices = @transform_0, window_bounds = array<i64: 4, 16, 16>}, {transform_indices = @transform_1, window_bounds = array<i64: 4, 8, 8>}, {transform_indices = @transform_2, window_bounds = array<i64: 4, 4, 4>}, {transform_indices = @transform_3, window_bounds = array<i64: 4, 2, 2>}, {transform_indices = @transform_4, window_bounds = array<i64: 4, 1, 1>}, {transform_indices = @transform_5, window_bounds = array<i64: 4, 1, 1>}, {transform_indices = @transform_6, window_bounds = array<i64: 4, 1, 1>}]} {
    %c0 = arith.constant 0 : index
    %c0_0 = arith.constant 0 : index
    %c0_1 = arith.constant 0 : index
    %0 = tpu.strided_load %arg1[%c0, %c0_0, %c0_1] {strides = array<i32: 1, 2, 1>} : memref<4x16x16xf32, #tpu.memory_space<vmem>>, vector<4x8x16xf32>
    %c0_2 = arith.constant 0 : index
    %c1 = arith.constant 1 : index
    %c0_3 = arith.constant 0 : index
    %1 = tpu.strided_load %arg1[%c0_2, %c1, %c0_3] {strides = array<i32: 1, 2, 1>} : memref<4x16x16xf32, #tpu.memory_space<vmem>>, vector<4x8x16xf32>
    %cst = arith.constant 0xFF800000 : f32
    %2 = vector.broadcast %cst : f32 to vector<4x1x16xf32>
    %3 = arith.maximumf %0, %1 : vector<4x8x16xf32>
    %4 = vector.extract_strided_slice %1 {offsets = [0, 0, 0], sizes = [4, 7, 16], strides = [1, 1, 1]} : vector<4x8x16xf32> to vector<4x7x16xf32>
    %5 = tpu.concatenate %2, %4 in 1 : vector<4x1x16xf32>, vector<4x7x16xf32> -> vector<4x8x16xf32>
    %6 = arith.maximumf %3, %5 : vector<4x8x16xf32>
    %7 = tpu.transpose %6, [0, 2, 1] : vector<4x8x16xf32> -> vector<4x16x8xf32>
    %c0_4 = arith.constant 0 : index
    %c0_5 = arith.constant 0 : index
    %c0_6 = arith.constant 0 : index
    %8 = vector.load %arg8[%c0_4, %c0_5, %c0_6] : memref<4x16x128xf32, #tpu.memory_space<vmem>>, vector<4x16x8xf32>
    tpu.vector_store %arg8[%c0_4, %c0_5, %c0_6], %7 {strides = array<i32>} : memref<4x16x128xf32, #tpu.memory_space<vmem>>, vector<4x16x8xf32>,
    %c0_7 = arith.constant 0 : index
    %c0_8 = arith.constant 0 : index
    %c0_9 = arith.constant 0 : index
    %9 = tpu.strided_load %arg8[%c0_7, %c0_8, %c0_9] {strides = array<i32: 1, 2, 1>} : memref<4x16x128xf32, #tpu.memory_space<vmem>>, vector<4x8x8xf32>
    %c0_10 = arith.constant 0 : index
    %c1_11 = arith.constant 1 : index
    %c0_12 = arith.constant 0 : index
    %10 = tpu.strided_load %arg8[%c0_10, %c1_11, %c0_12] {strides = array<i32: 1, 2, 1>} : memref<4x16x128xf32, #tpu.memory_space<vmem>>, vector<4x8x8xf32>
    %cst_13 = arith.constant 0xFF800000 : f32
    %11 = vector.broadcast %cst_13 : f32 to vector<4x1x8xf32>
    %12 = arith.maximumf %9, %10 : vector<4x8x8xf32>
    %13 = vector.extract_strided_slice %10 {offsets = [0, 0, 0], sizes = [4, 7, 8], strides = [1, 1, 1]} : vector<4x8x8xf32> to vector<4x7x8xf32>
    %14 = tpu.concatenate %11, %13 in 1 : vector<4x1x8xf32>, vector<4x7x8xf32> -> vector<4x8x8xf32>
    %15 = arith.maximumf %12, %14 : vector<4x8x8xf32>
    %16 = tpu.transpose %15, [0, 2, 1] : vector<4x8x8xf32> -> vector<4x8x8xf32>
    %c0_14 = arith.constant 0 : index
    %c0_15 = arith.constant 0 : index
    %c0_16 = arith.constant 0 : index
    %17 = vector.load %arg2[%c0_14, %c0_15, %c0_16] : memref<4x8x8xf32, #tpu.memory_space<vmem>>, vector<4x8x8xf32>
    tpu.vector_store %arg2[%c0_14, %c0_15, %c0_16], %16 {strides = array<i32>} : memref<4x8x8xf32, #tpu.memory_space<vmem>>, vector<4x8x8xf32>,
    %c0_17 = arith.constant 0 : index
    %c0_18 = arith.constant 0 : index
    %c0_19 = arith.constant 0 : index
    %18 = tpu.strided_load %arg2[%c0_17, %c0_18, %c0_19] {strides = array<i32: 1, 2, 1>} : memref<4x8x8xf32, #tpu.memory_space<vmem>>, vector<4x4x8xf32>
    %c0_20 = arith.constant 0 : index
    %c1_21 = arith.constant 1 : index
    %c0_22 = arith.constant 0 : index
    %19 = tpu.strided_load %arg2[%c0_20, %c1_21, %c0_22] {strides = array<i32: 1, 2, 1>} : memref<4x8x8xf32, #tpu.memory_space<vmem>>, vector<4x4x8xf32>
    %cst_23 = arith.constant 0xFF800000 : f32
    %20 = vector.broadcast %cst_23 : f32 to vector<4x1x8xf32>
    %21 = arith.maximumf %18, %19 : vector<4x4x8xf32>
    %22 = vector.extract_strided_slice %19 {offsets = [0, 0, 0], sizes = [4, 3, 8], strides = [1, 1, 1]} : vector<4x4x8xf32> to vector<4x3x8xf32>
    %23 = tpu.concatenate %20, %22 in 1 : vector<4x1x8xf32>, vector<4x3x8xf32> -> vector<4x4x8xf32>
    %24 = arith.maximumf %21, %23 : vector<4x4x8xf32>
    %25 = tpu.transpose %24, [0, 2, 1] : vector<4x4x8xf32> -> vector<4x8x4xf32>
    %c0_24 = arith.constant 0 : index
    %c0_25 = arith.constant 0 : index
    %c0_26 = arith.constant 0 : index
    %26 = vector.load %arg8[%c0_24, %c0_25, %c0_26] : memref<4x16x128xf32, #tpu.memory_space<vmem>>, vector<4x8x4xf32>
    tpu.vector_store %arg8[%c0_24, %c0_25, %c0_26], %25 {strides = array<i32>} : memref<4x16x128xf32, #tpu.memory_space<vmem>>, vector<4x8x4xf32>,
    %c0_27 = arith.constant 0 : index
    %c0_28 = arith.constant 0 : index
    %c0_29 = arith.constant 0 : index
    %27 = tpu.strided_load %arg8[%c0_27, %c0_28, %c0_29] {strides = array<i32: 1, 2, 1>} : memref<4x16x128xf32, #tpu.memory_space<vmem>>, vector<4x4x4xf32>
    %c0_30 = arith.constant 0 : index
    %c1_31 = arith.constant 1 : index
    %c0_32 = arith.constant 0 : index
    %28 = tpu.strided_load %arg8[%c0_30, %c1_31, %c0_32] {strides = array<i32: 1, 2, 1>} : memref<4x16x128xf32, #tpu.memory_space<vmem>>, vector<4x4x4xf32>
    %cst_33 = arith.constant 0xFF800000 : f32
    %29 = vector.broadcast %cst_33 : f32 to vector<4x1x4xf32>
    %30 = arith.maximumf %27, %28 : vector<4x4x4xf32>
    %31 = vector.extract_strided_slice %28 {offsets = [0, 0, 0], sizes = [4, 3, 4], strides = [1, 1, 1]} : vector<4x4x4xf32> to vector<4x3x4xf32>
    %32 = tpu.concatenate %29, %31 in 1 : vector<4x1x4xf32>, vector<4x3x4xf32> -> vector<4x4x4xf32>
    %33 = arith.maximumf %30, %32 : vector<4x4x4xf32>
    %34 = tpu.transpose %33, [0, 2, 1] : vector<4x4x4xf32> -> vector<4x4x4xf32>
    %c0_34 = arith.constant 0 : index
    %c0_35 = arith.constant 0 : index
    %c0_36 = arith.constant 0 : index
    %35 = vector.load %arg3[%c0_34, %c0_35, %c0_36] : memref<4x4x4xf32, #tpu.memory_space<vmem>>, vector<4x4x4xf32>
    tpu.vector_store %arg3[%c0_34, %c0_35, %c0_36], %34 {strides = array<i32>} : memref<4x4x4xf32, #tpu.memory_space<vmem>>, vector<4x4x4xf32>,
    %c0_37 = arith.constant 0 : index
    %c0_38 = arith.constant 0 : index
    %c0_39 = arith.constant 0 : index
    %36 = tpu.strided_load %arg3[%c0_37, %c0_38, %c0_39] {strides = array<i32: 1, 2, 1>} : memref<4x4x4xf32, #tpu.memory_space<vmem>>, vector<4x2x4xf32>
    %c0_40 = arith.constant 0 : index
    %c1_41 = arith.constant 1 : index
    %c0_42 = arith.constant 0 : index
    %37 = tpu.strided_load %arg3[%c0_40, %c1_41, %c0_42] {strides = array<i32: 1, 2, 1>} : memref<4x4x4xf32, #tpu.memory_space<vmem>>, vector<4x2x4xf32>
    %cst_43 = arith.constant 0xFF800000 : f32
    %38 = vector.broadcast %cst_43 : f32 to vector<4x1x4xf32>
    %39 = arith.maximumf %36, %37 : vector<4x2x4xf32>
    %40 = vector.extract_strided_slice %37 {offsets = [0, 0, 0], sizes = [4, 1, 4], strides = [1, 1, 1]} : vector<4x2x4xf32> to vector<4x1x4xf32>
    %41 = tpu.concatenate %38, %40 in 1 : vector<4x1x4xf32>, vector<4x1x4xf32> -> vector<4x2x4xf32>
    %42 = arith.maximumf %39, %41 : vector<4x2x4xf32>
    %43 = vector.extract_strided_slice %42 {offsets = [0, 0, 0], sizes = [4, 2, 1], strides = [1, 1, 1]} : vector<4x2x4xf32> to vector<4x2x1xf32>
    %44 = vector.extract_strided_slice %42 {offsets = [0, 0, 1], sizes = [4, 2, 1], strides = [1, 1, 1]} : vector<4x2x4xf32> to vector<4x2x1xf32>
    %45 = arith.maximumf %43, %44 : vector<4x2x1xf32>
    %46 = vector.extract_strided_slice %42 {offsets = [0, 0, 1], sizes = [4, 2, 1], strides = [1, 1, 1]} : vector<4x2x4xf32> to vector<4x2x1xf32>
    %47 = vector.extract_strided_slice %42 {offsets = [0, 0, 2], sizes = [4, 2, 1], strides = [1, 1, 1]} : vector<4x2x4xf32> to vector<4x2x1xf32>
    %48 = arith.maximumf %46, %47 : vector<4x2x1xf32>
    %49 = vector.extract_strided_slice %42 {offsets = [0, 0, 3], sizes = [4, 2, 1], strides = [1, 1, 1]} : vector<4x2x4xf32> to vector<4x2x1xf32>
    %50 = arith.maximumf %48, %49 : vector<4x2x1xf32>
    %51 = tpu.concatenate %45, %50 in 2 : vector<4x2x1xf32>, vector<4x2x1xf32> -> vector<4x2x2xf32>
    %c0_44 = arith.constant 0 : index
    %c0_45 = arith.constant 0 : index
    %c0_46 = arith.constant 0 : index
    %52 = vector.load %arg4[%c0_44, %c0_45, %c0_46] : memref<4x2x2xf32, #tpu.memory_space<vmem>>, vector<4x2x2xf32>
    tpu.vector_store %arg4[%c0_44, %c0_45, %c0_46], %51 {strides = array<i32>} : memref<4x2x2xf32, #tpu.memory_space<vmem>>, vector<4x2x2xf32>,
    %c0_47 = arith.constant 0 : index
    %c0_48 = arith.constant 0 : index
    %c0_49 = arith.constant 0 : index
    %53 = vector.load %arg4[%c0_47, %c0_48, %c0_49] : memref<4x2x2xf32, #tpu.memory_space<vmem>>, vector<4x1x2xf32>
    %c0_50 = arith.constant 0 : index
    %c1_51 = arith.constant 1 : index
    %c0_52 = arith.constant 0 : index
    %54 = vector.load %arg4[%c0_50, %c1_51, %c0_52] : memref<4x2x2xf32, #tpu.memory_space<vmem>>, vector<4x1x2xf32>
    %55 = arith.maximumf %53, %54 : vector<4x1x2xf32>
    %56 = vector.extract_strided_slice %55 {offsets = [0, 0, 0], sizes = [4, 1, 1], strides = [1, 1, 1]} : vector<4x1x2xf32> to vector<4x1x1xf32>
    %57 = vector.extract_strided_slice %55 {offsets = [0, 0, 1], sizes = [4, 1, 1], strides = [1, 1, 1]} : vector<4x1x2xf32> to vector<4x1x1xf32>
    %58 = arith.maximumf %56, %57 : vector<4x1x1xf32>
    %c0_53 = arith.constant 0 : index
    %c0_54 = arith.constant 0 : index
    %c0_55 = arith.constant 0 : index
    %59 = vector.load %arg5[%c0_53, %c0_54, %c0_55] : memref<4x1x1xf32, #tpu.memory_space<vmem>>, vector<4x1x1xf32>
    tpu.vector_store %arg5[%c0_53, %c0_54, %c0_55], %58 {strides = array<i32>} : memref<4x1x1xf32, #tpu.memory_space<vmem>>, vector<4x1x1xf32>,
    %c0_56 = arith.constant 0 : index
    %c0_57 = arith.constant 0 : index
    %c0_58 = arith.constant 0 : index
    %60 = vector.load %arg5[%c0_56, %c0_57, %c0_58] : memref<4x1x1xf32, #tpu.memory_space<vmem>>, vector<4x1x1xf32>
    %c0_59 = arith.constant 0 : index
    %c0_60 = arith.constant 0 : index
    %c0_61 = arith.constant 0 : index
    %61 = vector.load %arg6[%c0_59, %c0_60, %c0_61] : memref<4x1x1xf32, #tpu.memory_space<vmem>>, vector<4x1x1xf32>
    tpu.vector_store %arg6[%c0_59, %c0_60, %c0_61], %60 {strides = array<i32>} : memref<4x1x1xf32, #tpu.memory_space<vmem>>, vector<4x1x1xf32>,
    %c0_62 = arith.constant 0 : index
    %c0_63 = arith.constant 0 : index
    %c0_64 = arith.constant 0 : index
    %62 = vector.load %arg6[%c0_62, %c0_63, %c0_64] : memref<4x1x1xf32, #tpu.memory_space<vmem>>, vector<4x1x1xf32>
    %c0_65 = arith.constant 0 : index
    %c0_66 = arith.constant 0 : index
    %c0_67 = arith.constant 0 : index
    %63 = vector.load %arg7[%c0_65, %c0_66, %c0_67] : memref<4x1x1xf32, #tpu.memory_space<vmem>>, vector<4x1x1xf32>
    tpu.vector_store %arg7[%c0_65, %c0_66, %c0_67], %62 {strides = array<i32>} : memref<4x1x1xf32, #tpu.memory_space<vmem>>, vector<4x1x1xf32>,
    return
  }
  func.func @transform_0(%arg0: i32) -> (i32, i32, i32) {
    %c0_i32 = arith.constant 0 : i32
    %c0_i32_0 = arith.constant 0 : i32
    %c0_i32_1 = arith.constant 0 : i32
    return %arg0, %c0_i32, %c0_i32_0 : i32, i32, i32
  }
  func.func @transform_1(%arg0: i32) -> (i32, i32, i32) {
    %c0_i32 = arith.constant 0 : i32
    %c0_i32_0 = arith.constant 0 : i32
    %c0_i32_1 = arith.constant 0 : i32
    return %arg0, %c0_i32, %c0_i32_0 : i32, i32, i32
  }
  func.func @transform_2(%arg0: i32) -> (i32, i32, i32) {
    %c0_i32 = arith.constant 0 : i32
    %c0_i32_0 = arith.constant 0 : i32
    %c0_i32_1 = arith.constant 0 : i32
    return %arg0, %c0_i32, %c0_i32_0 : i32, i32, i32
  }
  func.func @transform_3(%arg0: i32) -> (i32, i32, i32) {
    %c0_i32 = arith.constant 0 : i32
    %c0_i32_0 = arith.constant 0 : i32
    %c0_i32_1 = arith.constant 0 : i32
    return %arg0, %c0_i32, %c0_i32_0 : i32, i32, i32
  }
  func.func @transform_4(%arg0: i32) -> (i32, i32, i32) {
    %c0_i32 = arith.constant 0 : i32
    %c0_i32_0 = arith.constant 0 : i32
    %c0_i32_1 = arith.constant 0 : i32
    return %arg0, %c0_i32, %c0_i32_0 : i32, i32, i32
  }
  func.func @transform_5(%arg0: i32) -> (i32, i32, i32) {
    %c0_i32 = arith.constant 0 : i32
    %c0_i32_0 = arith.constant 0 : i32
    %c0_i32_1 = arith.constant 0 : i32
    return %arg0, %c0_i32, %c0_i32_0 : i32, i32, i32
  }
  func.func @transform_6(%arg0: i32) -> (i32, i32, i32) {
    %c0_i32 = arith.constant 0 : i32
    %c0_i32_0 = arith.constant 0 : i32
    %c0_i32_1 = arith.constant 0 : i32
    return %arg0, %c0_i32, %c0_i32_0 : i32, i32, i32
  }
}

</mosaic_0001>

<bundles_post_ra>
// kernel: supply_mask_to_transform.1
= control target key start
LH: loop header
LB: loop body
LE: loop exit
PB: predicated region body
PF: predicated region fallthrough
CT: control target
= control target key end

     0   :  { %s1986_s0 = inlined_call_operand.hbm [shape: f32[8,16,16], index: 0, kind: input, shape index: {}]   ;;  %s1987_s1 = inlined_call_operand.hbm [shape: f32[8,8,8], index: 1, kind: output, shape index: {0}]   ;;  %s1988_s2 = inlined_call_operand.hbm [shape: f32[8,4,4], index: 2, kind: output, shape index: {1}]   ;;  %s1989_s3 = inlined_call_operand.vmem [shape: f32[8,2,2], index: 3, kind: output, shape index: {2}]   ;;  %s1990_s4 = inlined_call_operand.vmem [shape: f32[8,1,1], index: 4, kind: output, shape index: {3}]   ;;  %s1991_s5 = inlined_call_operand.vmem [shape: f32[8,1,1], index: 5, kind: output, shape index: {4}]   ;;  %s1992_s6 = inlined_call_operand.vmem [shape: f32[8,1,1], index: 6, kind: output, shape index: {5}]  }
   0x1   :  { %1993 = sst [smem:[#allocation13_spill]] %s1986_s0 }
   0x2   :  { %1994 = sst [smem:[#allocation14_spill]] %s1989_s3 }
   0x3   :  { %12 = vsyncpa [#allocation4], 0 }
   0x4   :  { %14 = vsyncpa [#allocation4 + $0x1], 0 }
   0x5   :  { %15 = vsyncpa [#allocation5], 0 }
   0x6   :  { %17 = vsyncpa [#allocation5 + $0x1], 0 }
   0x7   :  { %18 = vsyncpa [#allocation8], 0 }
   0x8   :  { %20 = vsyncpa [#allocation8 + $0x1], 0  ;;  %s1703_s21 = smov 0   ;;  %s1705_s22 = smov 0  }
   0x9   :  { %s1707_s23 = smov 0   ;;  %s1709_s24 = smov 0  }
   0xa LB: > { %s1724_s25 = sadd.s32 4294967295, %s1658_s24   ;;  %s1421_s26 = sadd.s32 4294967294, %s1658_s24   ;;  %s1658_s24 = sphi %s1709_s24, %s2008_s24   ;;  %s1654_s23 = sphi %s1707_s23, %s2007_s23   ;;  %s1650_s22 = sphi %s1705_s22, %s2006_s22   ;;  %s1646_s21 = sphi %s1703_s21, %s2005_s21  }
   0xb   : > { %s1728_s27 = sadd.s32 1, %s1658_s24   ;;  %s33_s28 = sadd.s32 1, %s1654_s23 }
   0xc   : > { %s30_s29 = ssub.s32 %s1658_s24, %s1728_s27  ;;  %p40_p0 = scmp.ne.s32.totalorder %s1654_s23, %s1650_s22 }
   0xd   : > { %p31_p1 = scmp.eq.s32.totalorder %s30_s29, 0  ;;  %p41_p2 = scmp.eq.s32.totalorder %s1658_s24, 0 }
   0xe   : > { %p46_p3 = scmp.ne.s32.totalorder %s1650_s22, %s1646_s21  ;;  %p47_p4 = scmp.eq.s32.totalorder %s1724_s25, 0 }
   0xf   : > { %s1740_s30 = scalar_select %p31_p1, %s1654_s23, %s33_s28  }
  0x10   : > { %p1742_p5 = por %p41_p2, %p40_p0  ;;  %p1746_p6 = por %p47_p4, %p46_p3 }
  0x11   : > { %1995 = sst [smem:[#allocation12_spill]] %s1740_s30  ;;  %p70_p7 = scmp.eq.s32.totalorder %s1724_s25, 1 }
  0x12   : > { %p76_p8 = scmp.eq.s32.totalorder %s1421_s26, 1  ;;  %p1487_p10 = scmp.lt.s32.totalorder %s1658_s24, 2 }
  0x13   : > { %p1753_p11 = por %p70_p7, %p40_p0  ;;  %s226_s11 = sand.u32 1, %s1654_s23  }
  0x14   : > { %p1757_p12 = por %p76_p8, %p46_p3  ;;  %s1467_s12 = sshll.u32 %s1658_s24, 6 }
  0x15   : > { %s1424_s13 = sshll.u32 %s226_s11, 6  ;;  %s2000_s0 = sld [smem:[#allocation13_spill]] }
  0x16   : > { %s230_s18 = scalar_lea.vmem [#allocation3], %s1424_s13  ;;  %p1768_p13 = pnand %p1487_p10, %p1742_p5 }
  0x17   : > { %s239_s19 = sshll.u32 %s230_s18, 4  ;;  %p1428_p0 = scmp.ge.s32.totalorder %s1658_s24, 1  ;;  %s240_s19 = int_to_ptr.vmem [resolvable:$true] %s239_s19 }
  0x18   : > { %p247_p1 = scmp.lt.s32.totalorder %s1658_s24, 3  ;;  %s227_s26 = scalar_lea.sflag [#allocation4], %s226_s11 }
  0x19   : > { %p1534_p3 = pneg %p1768_p13 }
  0x1b   : > { %s236_s16 = scalar_lea.hbm %s2000_s0, %s1467_s12  ;;  %s1537_s7 = scalar_lea.hbm %s2000_s0, 128 }
  0x1c   : > { %s237_s17 = sshll.u32 %s236_s16, 4  ;;  %s238_s17 = int_to_ptr.hbm [resolvable:$true] %s237_s17 }
  0x1d   : > { %s1530_s28 = sshra.s32 %s238_s17, 4  ;;  %s1531_s28 = int_to_ptr.hbm [resolvable:$true] %s1530_s28 }
  0x1e   : > { %s1532_s29 = scalar_lea.hbm %s1531_s28, 64  ;;  %p1538_p5 = scmp.lt.s32.totalorder %s1531_s28, %s2000_s0 }
  0x1f   : > { %p1533_p2 = scmp.ne.s32.totalorder %s1531_s28, %s1532_s29  ;;  %p1539_p8 = scmp.lt.s32.totalorder %s1537_s7, %s1532_s29 }
  0x21   : > { %p1535_p4 = pnand %p1534_p3, %p1533_p2  ;;  %p1540_p10 = por %p1539_p8, %p1538_p5 }
  0x23   : > { %p1536_p7 = pneg %p1535_p4 }
  0x25   : > { %p1541_p9 = pnand %p1540_p10, %p1536_p7 }
  0x27   : > { %1544 = shalt.err (!%p1541_p9)
}
  0x28   : > { %s1660_s11 = smov 128   ;;  %s1661_s16 = smov 8  }
  0x29   : > { %1479 = dma.hbm_to_vmem [thread:$0]  (!%p1768_p13), %s238_s17, 1024, %s240_s19, %s227_s26, %s1660_s11, %s1660_s11, %s1661_s16  }
  0x2a   : > { %p248_p2 = pnand %p1428_p0, %p247_p1 }
  0x2b   : > { %s1789_s18 = sand.u32 (!%p248_p2), 1, %s1650_s22  }
  0x2c   : > { %251 = sbr.rel (%p248_p2) target bundleno = 1065 (0x429), region = 24  ;;  %s1429_s28 = sshll.u32 (!%p248_p2), %s1789_s18, 6 }
  0x2d   : > { %s254_s29 = scalar_lea.sflag (!%p248_p2), [#allocation4], %s1789_s18  ;;  %s257_s12 = scalar_lea.vmem (!%p248_p2), [#allocation3], %s1429_s28 }
  0x31   : > { %1633 = dma.done.wait (%p1746_p6), %s254_s29, 1024  }
  0x32   : > { %1635 = vsyncadd (%p1746_p6), %s254_s29, 4294966272  ;;  %vm364_vm0 = vcmask 1040384   ;;  %v1438_v0 = vld [vmem:[%s257_s12 + $0x20] ss:$2 sm:$0xff]  ;;  %v1442_v1 = vld [vmem:[%s257_s12 + $0x21] ss:$2 sm:$0xff] }
  0x33   : > { %v333_v2 = vld [vmem:[%s257_s12] ss:$2 sm:$0xff]  ;;  %v350_v3 = vmax.f32 %v1438_v0, %v1442_v1  ;;  %v358_v4 = vrot.slane %v1442_v1, 7  ;;  %v1440_v5 = vld [vmem:[%s257_s12 + $0x1] ss:$2 sm:$0xff]  ;;  %vm501_vm1 = vcmask 64512  }
  0x34   : > { %v348_v6 = vmax.f32 %v333_v2, %v1440_v5  ;;  %v356_v7 = vrot.slane %v1440_v5, 7  ;;  %v1443_v12 = vld [vmem:[%s257_s12 + $0x31] ss:$2 sm:$0xff]  ;;  %v1439_v14 = vld [vmem:[%s257_s12 + $0x30] ss:$2 sm:$0xff]  ;;  %s1430_s8 = sshll.u32 %s1789_s18, 5 }
  0x35   : > { %v367_v8 = vsel %vm364_vm0, -inf, %v358_v4  ;;  %v1441_v13 = vld [vmem:[%s257_s12 + $0x11] ss:$2 sm:$0xff]  ;;  %v359_v15 = vrot.slane %v1443_v12, 7  ;;  %v1437_v16 = vld [vmem:[%s257_s12 + $0x10] ss:$2 sm:$0xff]  ;;  %v351_v18 = vmax.f32 %v1439_v14, %v1443_v12 }
  0x36   : > { %v371_v9 = vmax.f32 %v350_v3, %v367_v8  ;;  %v365_v10 = vsel %vm364_vm0, -inf, %v356_v7  ;;  %v357_v17 = vrot.slane %v1441_v13, 7  ;;  %v349_v20 = vmax.f32 %v1437_v16, %v1441_v13  ;;  %s1814_s17 = scalar_lea.vmem [#allocation6], %s1430_s8  ;;  %s1431_s19 = sshll.u32 %s1789_s18, 4 }
  0x37   : > { %v369_v11 = vmax.f32 %v348_v6, %v365_v10  ;;  %v368_v19 = vsel %vm364_vm0, -inf, %v359_v15  ;;  %vm848_vm2 = vcmask 31744   ;;  %vm1016_vm3 = vcmask 27648   ;;  %s1845_s20 = scalar_lea.vmem [#allocation7], %s1431_s19  ;;  %s1662_s26 = smov 127  }
  0x38   : > { %437 = vxpose.xlu1.b32.start.end [1/1] (short) (narrow) %v371_v9, 16  ;;  %v366_v21 = vsel %vm364_vm0, -inf, %v357_v17  ;;  %v372_v22 = vmax.f32 %v351_v18, %v368_v19  ;;  %s1663_s13 = smov 126   ;;  %s1432_s7 = sshll.u32 %s1724_s25, 2  ;;  %vm1101_vm4 = vcmask 9216   ;;  %vm1096_vm5 = vcmask 7168  }
  0x39   : > { %373 = vxpose.xlu0.b32.start.end [1/1] (short) (narrow) %v369_v11, 16  ;;  %v370_v23 = vmax.f32 %v349_v20, %v366_v21  ;;  %p313_p6 = scmp.lt.s32.totalorder %s1432_s7, 7  ;;  %s2002_s3 = sld [smem:[#allocation14_spill]] }
  0x3a   : > { %s1468_s28 = sshll.u32 %s1724_s25, 5  ;;  %s1469_s29 = sshll.u32 %s1724_s25, 4 }
  0x3b   : > { %s2010_s7 = smov (!%p313_p6, %s1432_s7), 7  ;;  %s1193_s19 = scalar_lea.hbm %s1987_s1, %s1468_s28 }
  0x3c   : > { %s1433_s14 = sshll.u32 %s2010_s7, 1  ;;  %s1210_s15 = scalar_lea.hbm %s1988_s2, %s1469_s29 }
  0x3d   : > { %s1194_s11 = sshll.u32 %s1814_s17, 4  ;;  %s1196_s0 = sshll.u32 %s1193_s19, 4  ;;  %s1195_s11 = int_to_ptr.vmem [resolvable:$true] %s1194_s11  ;;  %s1197_s0 = int_to_ptr.hbm [resolvable:$true] %s1196_s0 }
  0x3e   : > { %s1580_s28 = scalar_lea.hbm %s1987_s1, 64 }
  0x3f   : > { %s1878_s16 = scalar_lea.vmem %s2002_s3, %s1433_s14  ;;  %s1160_s3 = scalar_lea.sflag [#allocation5], %s1789_s18 }
  0x48   : > { %469 = vxpose.xlu1.b32.start.end [1/1] (short) (narrow) %v372_v22, 16 }
  0x49   : > { %405 = vxpose.xlu0.b32.start.end [1/1] (short) (narrow) %v370_v23, 16 }
  0xdc   : > { %v453_v24 = vpop.trf.xlu1 }
  0xdd   : > { %506 = vst.msk [vmem:[#allocation2 + $0x20] sm:$0xff] %vm501_vm1, %v453_v24  ;;  %v389_v25 = vpop.trf.xlu0 }
  0xde   : > { %502 = vst.msk [vmem:[#allocation2] sm:$0xff] %vm501_vm1, %v389_v25 }
  0xe4   : > { %v454_v26 = vpop.trf.xlu1 }
  0xe5   : > { %507 = vst.msk [vmem:[#allocation2 + $0x28] sm:$0xff] %vm501_vm1, %v454_v26  ;;  %v390_v27 = vpop.trf.xlu0 }
  0xe6   : > { %503 = vst.msk [vmem:[#allocation2 + $0x8] sm:$0xff] %vm501_vm1, %v390_v27 }
  0xec   : > { %v485_v28 = vpop.trf.xlu1  ;;  %v522_v47 = vld [vmem:[#allocation2 + $0x21] ss:$2 sm:$0xff]  ;;  %v514_v51 = vld [vmem:[#allocation2 + $0x20] ss:$2 sm:$0xff] }
  0xed   : > { %508 = vst.msk [vmem:[#allocation2 + $0x30] sm:$0xff] %vm501_vm1, %v485_v28  ;;  %v421_v29 = vpop.trf.xlu0  ;;  %v510_v30 = vld [vmem:[#allocation2] ss:$2 sm:$0xff]  ;;  %v518_v31 = vld [vmem:[#allocation2 + $0x1] ss:$2 sm:$0xff]  ;;  %v535_v52 = vrot.slane %v522_v47, 7  ;;  %v527_v53 = vmax.f32 %v514_v51, %v522_v47 }
  0xee   : > { %504 = vst.msk [vmem:[#allocation2 + $0x10] sm:$0xff] %vm501_vm1, %v421_v29  ;;  %v525_v32 = vmax.f32 %v510_v30, %v518_v31  ;;  %v533_v33 = vrot.slane %v518_v31, 7 }
  0xef   : > { %v543_v54 = vsel %vm364_vm0, -inf, %v535_v52 }
  0xf0   : > { %v541_v34 = vsel %vm364_vm0, -inf, %v533_v33  ;;  %v547_v55 = vmax.f32 %v527_v53, %v543_v54 }
  0xf1   : > { %v545_v35 = vmax.f32 %v525_v32, %v541_v34 }
  0xf3   : > { %549 = vxpose.xlu2.b32.start.end [1/1] (short) (narrow) %v545_v35, 8 }
  0xf4   : > { %v486_v36 = vpop.trf.xlu1 }
  0xf5   : > { %509 = vst.msk [vmem:[#allocation2 + $0x38] sm:$0xff] %vm501_vm1, %v486_v36  ;;  %v422_v37 = vpop.trf.xlu0 }
  0xf6   : > { %505 = vst.msk [vmem:[#allocation2 + $0x18] sm:$0xff] %vm501_vm1, %v422_v37 }
  0xfc   : > { %v516_v38 = vld [vmem:[#allocation2 + $0x30] ss:$2 sm:$0xff]  ;;  %v524_v39 = vld [vmem:[#allocation2 + $0x31] ss:$2 sm:$0xff] }
  0xfd   : > { %v528_v40 = vmax.f32 %v516_v38, %v524_v39  ;;  %v536_v41 = vrot.slane %v524_v39, 7  ;;  %v512_v42 = vld [vmem:[#allocation2 + $0x10] ss:$2 sm:$0xff]  ;;  %v520_v43 = vld [vmem:[#allocation2 + $0x11] ss:$2 sm:$0xff] }
  0xfe   : > { %v526_v44 = vmax.f32 %v512_v42, %v520_v43  ;;  %v534_v45 = vrot.slane %v520_v43, 7 }
  0xff   : > { %v544_v46 = vsel %vm364_vm0, -inf, %v536_v41 }
 0x100   : > { %v548_v48 = vmax.f32 %v528_v40, %v544_v46  ;;  %v542_v49 = vsel %vm364_vm0, -inf, %v534_v45 }
 0x101   : > { %v546_v50 = vmax.f32 %v526_v44, %v542_v49 }
 0x102   : > { %645 = vxpose.xlu0.b32.start.end [1/1] (short) (narrow) %v548_v48, 8 }
 0x103   : > { %581 = vxpose.xlu2.b32.start.end [1/1] (short) (narrow) %v546_v50, 8 }
 0x10b   : > { %613 = vxpose.xlu2.b32.start.end [1/1] (short) (narrow) %v547_v55, 8 }
 0x18c   : > { %v565_v56 = vpop.trf.xlu2 }
 0x18d   : > { %677 = vst.msk [vmem:[%s1814_s17] sm:$0xff] %vm501_vm1, %v565_v56 }
 0x194   : > { %v681_v57 = vld [vmem:[%s1814_s17] ss:$2 sm:$0xf]  ;;  %v1447_v58 = vld [vmem:[%s1814_s17 + $0x1] ss:$2 sm:$0xf] }
 0x195   : > { %v696_v59 = vmax.f32 %v681_v57, %v1447_v58  ;;  %v704_v60 = vrot.slane %v1447_v58, 7 }
 0x197   : > { %v712_v61 = vsel %vm364_vm0, -inf, %v704_v60 }
 0x198   : > { %v716_v62 = vmax.f32 %v696_v59, %v712_v61 }
 0x19a   : > { %720 = vxpose.xlu1.b32.start.end [1/1] (short) (narrow) %v716_v62, 8 }
 0x19c   : > { %v597_v63 = vpop.trf.xlu2 }
 0x19d   : > { %678 = vst.msk [vmem:[%s1814_s17 + $0x8] sm:$0xff] %vm501_vm1, %v597_v63 }
 0x1a4   : > { %v629_v0 = vpop.trf.xlu2  ;;  %v1444_v1 = vld [vmem:[%s1814_s17 + $0x8] ss:$2 sm:$0xf]  ;;  %v1448_v2 = vld [vmem:[%s1814_s17 + $0x9] ss:$2 sm:$0xf] }
 0x1a5   : > { %679 = vst.msk [vmem:[%s1814_s17 + $0x10] sm:$0xff] %vm501_vm1, %v629_v0  ;;  %v697_v3 = vmax.f32 %v1444_v1, %v1448_v2  ;;  %v705_v4 = vrot.slane %v1448_v2, 7 }
 0x1a6   : > { %v661_v5 = vpop.trf.xlu0 }
 0x1a7   : > { %680 = vst.msk [vmem:[%s1814_s17 + $0x18] sm:$0xff] %vm501_vm1, %v661_v5  ;;  %v713_v6 = vsel %vm364_vm0, -inf, %v705_v4 }
 0x1a8   : > { %v717_v7 = vmax.f32 %v697_v3, %v713_v6 }
 0x1aa   : > { %752 = vxpose.xlu2.b32.start.end [1/1] (short) (narrow) %v717_v7, 8 }
 0x1ac   : > { %v1445_v8 = vld [vmem:[%s1814_s17 + $0x10] ss:$2 sm:$0xf]  ;;  %v1449_v9 = vld [vmem:[%s1814_s17 + $0x11] ss:$2 sm:$0xf] }
 0x1ad   : > { %v698_v10 = vmax.f32 %v1445_v8, %v1449_v9  ;;  %v706_v11 = vrot.slane %v1449_v9, 7 }
 0x1ae   : > { %v1446_v12 = vld [vmem:[%s1814_s17 + $0x18] ss:$2 sm:$0xf]  ;;  %v1450_v13 = vld [vmem:[%s1814_s17 + $0x19] ss:$2 sm:$0xf] }
 0x1af   : > { %v714_v14 = vsel %vm364_vm0, -inf, %v706_v11  ;;  %v699_v15 = vmax.f32 %v1446_v12, %v1450_v13  ;;  %v707_v16 = vrot.slane %v1450_v13, 7 }
 0x1b0   : > { %v718_v17 = vmax.f32 %v698_v10, %v714_v14 }
 0x1b1   : > { %v715_v18 = vsel %vm364_vm0, -inf, %v707_v16 }
 0x1b2   : > { %784 = vxpose.xlu2.b32.start.end [1/1] (short) (narrow) %v718_v17, 8  ;;  %v719_v19 = vmax.f32 %v699_v15, %v715_v18 }
 0x1b4   : > { %816 = vxpose.xlu0.b32.start.end [1/1] (short) (narrow) %v719_v19, 8 }
 0x23e   : > { %v736_v20 = vpop.trf.xlu1 }
 0x23f   : > { %849 = vst.msk [vmem:[#allocation2] sm:$0xff] %vm848_vm2, %v736_v20 }
 0x243   : > { %v768_v21 = vpop.trf.xlu2 }
 0x244   : > { %850 = vst.msk [vmem:[#allocation2 + $0x10] sm:$0xff] %vm848_vm2, %v768_v21 }
 0x246   : > { %v853_v22 = vld [vmem:[#allocation2] ss:$2 sm:$0xf]  ;;  %v860_v23 = vld [vmem:[#allocation2 + $0x1] ss:$2 sm:$0xf] }
 0x247   : > { %v864_v24 = vmax.f32 %v853_v22, %v860_v23  ;;  %v872_v25 = vrot.slane %v860_v23, 7 }
 0x249   : > { %v880_v26 = vsel %vm364_vm0, -inf, %v872_v25 }
 0x24a   : > { %v884_v27 = vmax.f32 %v864_v24, %v880_v26 }
 0x24b   : > { %v800_v28 = vpop.trf.xlu2  ;;  %v855_v29 = vld [vmem:[#allocation2 + $0x10] ss:$2 sm:$0xf]  ;;  %v861_v30 = vld [vmem:[#allocation2 + $0x11] ss:$2 sm:$0xf] }
 0x24c   : > { %851 = vst.msk [vmem:[#allocation2 + $0x20] sm:$0xff] %vm848_vm2, %v800_v28  ;;  %888 = vxpose.xlu1.b32.start.end [1/1] (short) (narrow) %v884_v27, 8  ;;  %v865_v31 = vmax.f32 %v855_v29, %v861_v30  ;;  %v873_v32 = vrot.slane %v861_v30, 7 }
 0x24e   : > { %v881_v33 = vsel %vm364_vm0, -inf, %v873_v32 }
 0x24f   : > { %v885_v34 = vmax.f32 %v865_v31, %v881_v33 }
 0x251   : > { %920 = vxpose.xlu2.b32.start.end [1/1] (short) (narrow) %v885_v34, 8 }
 0x253   : > { %v857_v35 = vld [vmem:[#allocation2 + $0x20] ss:$2 sm:$0xf]  ;;  %v862_v36 = vld [vmem:[#allocation2 + $0x21] ss:$2 sm:$0xf] }
 0x254   : > { %v866_v37 = vmax.f32 %v857_v35, %v862_v36  ;;  %v874_v38 = vrot.slane %v862_v36, 7 }
 0x256   : > { %v882_v39 = vsel %vm364_vm0, -inf, %v874_v38 }
 0x257   : > { %v886_v40 = vmax.f32 %v866_v37, %v882_v39 }
 0x258   : > { %v832_v41 = vpop.trf.xlu0 }
 0x259   : > { %952 = vxpose.xlu0.b32.start.end [1/1] (short) (narrow) %v886_v40, 8  ;;  %852 = vst.msk [vmem:[#allocation2 + $0x30] sm:$0xff] %vm848_vm2, %v832_v41 }
 0x260   : > { %v859_v42 = vld [vmem:[#allocation2 + $0x30] ss:$2 sm:$0xf]  ;;  %v863_v43 = vld [vmem:[#allocation2 + $0x31] ss:$2 sm:$0xf] }
 0x261   : > { %v867_v44 = vmax.f32 %v859_v42, %v863_v43  ;;  %v875_v45 = vrot.slane %v863_v43, 7 }
 0x263   : > { %v883_v46 = vsel %vm364_vm0, -inf, %v875_v45 }
 0x264   : > { %v887_v47 = vmax.f32 %v867_v44, %v883_v46 }
 0x266   : > { %984 = vxpose.xlu1.b32.start.end [1/1] (short) (narrow) %v887_v47, 8 }
 0x2ea   : > { %v936_v48 = vpop.trf.xlu2 }
 0x2eb   : > { %1018 = vst.msk [vmem:[%s1845_s20 + $0x4] sm:$0xf] %vm1016_vm3, %v936_v48 }
 0x2f0   : > { %v904_v49 = vpop.trf.xlu1 }
 0x2f1   : > { %1017 = vst.msk [vmem:[%s1845_s20] sm:$0xf] %vm1016_vm3, %v904_v49 }
 0x2f2   : > { %v1451_v50 = vld [vmem:[%s1845_s20 + $0x4] ss:$2 sm:$0x3]  ;;  %v1455_v51 = vld [vmem:[%s1845_s20 + $0x5] ss:$2 sm:$0x3] }
 0x2f3   : > { %v1037_v52 = vmax.f32 %v1451_v50, %v1455_v51  ;;  %v1045_v53 = vrot.slane %v1455_v51, 7 }
 0x2f5   : > { %v1053_v54 = vsel %vm364_vm0, -inf, %v1045_v53 }
 0x2f6   : > { %v1057_v55 = vmax.f32 %v1037_v52, %v1053_v54 }
 0x2f8   : > { %1066 = vrot.lane.b32.xlu0 %v1057_v55, %s1662_s26  ;;  %v1021_v56 = vld [vmem:[%s1845_s20] ss:$2 sm:$0x3]  ;;  %v1454_v57 = vld [vmem:[%s1845_s20 + $0x1] ss:$2 sm:$0x3] }
 0x2f9   : > { %v1036_v58 = vmax.f32 %v1021_v56, %v1454_v57  ;;  %v1044_v59 = vrot.slane %v1454_v57, 7 }
 0x2fb   : > { %v1052_v60 = vsel %vm364_vm0, -inf, %v1044_v59 }
 0x2fc   : > { %v1056_v61 = vmax.f32 %v1036_v58, %v1052_v60 }
 0x2fd   : > { %v968_v62 = vpop.trf.xlu0 }
 0x2fe   : > { %1019 = vst.msk [vmem:[%s1845_s20 + $0x8] sm:$0xf] %vm1016_vm3, %v968_v62  ;;  %1064 = vrot.lane.b32.xlu2 %v1056_v61, %s1662_s26 }
 0x305   : > { %v1452_v63 = vld [vmem:[%s1845_s20 + $0x8] ss:$2 sm:$0x3]  ;;  %v1456_v0 = vld [vmem:[%s1845_s20 + $0x9] ss:$2 sm:$0x3] }
 0x306   : > { %v1038_v1 = vmax.f32 %v1452_v63, %v1456_v0  ;;  %v1046_v2 = vrot.slane %v1456_v0, 7 }
 0x308   : > { %v1054_v3 = vsel %vm364_vm0, -inf, %v1046_v2 }
 0x309   : > { %v1058_v4 = vmax.f32 %v1038_v1, %v1054_v3 }
 0x30a   : > { %v1000_v5 = vpop.trf.xlu1 }
 0x30b   : > { %1020 = vst.msk [vmem:[%s1845_s20 + $0xc] sm:$0xf] %vm1016_vm3, %v1000_v5  ;;  %1068 = vrot.lane.b32.xlu1 %v1058_v4, %s1662_s26 }
 0x312   : > { %v1453_v6 = vld [vmem:[%s1845_s20 + $0xc] ss:$2 sm:$0x3]  ;;  %v1457_v7 = vld [vmem:[%s1845_s20 + $0xd] ss:$2 sm:$0x3] }
 0x313   : > { %1080 = vrot.lane.b32.xlu1 %v1056_v61, %s1663_s13  ;;  %v1039_v8 = vmax.f32 %v1453_v6, %v1457_v7  ;;  %v1047_v9 = vrot.slane %v1457_v7, 7 }
 0x315   : > { %v1055_v10 = vsel %vm364_vm0, -inf, %v1047_v9 }
 0x316   : > { %v1059_v11 = vmax.f32 %v1039_v8, %v1055_v10 }
 0x318   : > { %1070 = vrot.lane.b32.xlu2 %v1059_v11, %s1662_s26 }
 0x31b   : > { %1082 = vrot.lane.b32.xlu1 %v1057_v55, %s1663_s13 }
 0x320   : > { %1084 = vrot.lane.b32.xlu2 %v1058_v4, %s1663_s13 }
 0x323   : > { %1086 = vrot.lane.b32.xlu1 %v1059_v11, %s1663_s13 }
 0x358   : > { %v1065_v12 = vpop.permute.xlu2 %1064 }
 0x359   : > { %v1076_v15 = vmax.f32 %v1056_v61, %v1065_v12 }
 0x36a   : > { %v1067_v19 = vpop.permute.xlu0 %1066 }
 0x36b   : > { %v1077_v21 = vmax.f32 %v1057_v55, %v1067_v19 }
 0x372   : > { %v1071_v14 = vpop.permute.xlu2 %1070 }
 0x373   : > { %v1079_v28 = vmax.f32 %v1059_v11, %v1071_v14 }
 0x37a   : > { %v1085_v22 = vpop.permute.xlu2 %1084 }
 0x37d   : > { %v1069_v13 = vpop.permute.xlu1 %1068 }
 0x37e   : > { %v1078_v20 = vmax.f32 %v1058_v4, %v1069_v13 }
 0x380   : > { %v1094_v23 = vmax.f32 %v1078_v20, %v1085_v22 }
 0x382   : > { %v1099_v27 = vsel %vm1096_vm5, %v1078_v20, %v1094_v23 }
 0x383   : > { %1104 = vst.msk [vmem:[%s1878_s16 + $0x4] sm:$0x3] %vm1101_vm4, %v1099_v27 }
 0x385   : > { %v1081_v16 = vpop.permute.xlu1 %1080 }
 0x386   : > { %v1092_v17 = vmax.f32 %v1076_v15, %v1081_v16 }
 0x388   : > { %v1097_v18 = vsel %vm1096_vm5, %v1076_v15, %v1092_v17 }
 0x389   : > { %1102 = vst.msk [vmem:[%s1878_s16] sm:$0x3] %vm1101_vm4, %v1097_v18 }
 0x38a   : > { %v1108_v32 = vld [vmem:[%s1878_s16 + $0x4] sm:$0x1]  ;;  %v1112_v33 = vld [vmem:[%s1878_s16 + $0x5] sm:$0x1] }
 0x38b   : > { %v1895_v35 = vmax.f32 %v1108_v32, %v1112_v33 }
 0x38d   : > { %v1083_v24 = vpop.permute.xlu1 %1082  ;;  %1126 = vrot.lane.b32.xlu1 %v1895_v35, %s1662_s26 }
 0x38e   : > { %v1093_v25 = vmax.f32 %v1077_v21, %v1083_v24 }
 0x390   : > { %v1098_v26 = vsel %vm1096_vm5, %v1077_v21, %v1093_v25  ;;  %v1106_v37 = vld [vmem:[%s1878_s16] sm:$0x1]  ;;  %v1110_v38 = vld [vmem:[%s1878_s16 + $0x1] sm:$0x1] }
 0x391   : > { %1103 = vst.msk [vmem:[%s1878_s16 + $0x2] sm:$0x3] %vm1101_vm4, %v1098_v26  ;;  %v1114_v40 = vmax.f32 %v1106_v37, %v1110_v38 }
 0x393   : > { %1122 = vrot.lane.b32.xlu0 %v1114_v40, %s1662_s26 }
 0x395   : > { %v1087_v29 = vpop.permute.xlu1 %1086 }
 0x396   : > { %v1095_v30 = vmax.f32 %v1079_v28, %v1087_v29 }
 0x398   : > { %v1100_v31 = vsel %vm1096_vm5, %v1079_v28, %v1095_v30  ;;  %v1107_v34 = vld [vmem:[%s1878_s16 + $0x2] sm:$0x1]  ;;  %v1111_v36 = vld [vmem:[%s1878_s16 + $0x3] sm:$0x1] }
 0x399   : > { %1105 = vst.msk [vmem:[%s1878_s16 + $0x6] sm:$0x3] %vm1101_vm4, %v1100_v31  ;;  %v1900_v39 = vmax.f32 %v1107_v34, %v1111_v36 }
 0x39b   : > { %1124 = vrot.lane.b32.xlu2 %v1900_v39, %s1662_s26 }
 0x3a0   : > { %v1109_v41 = vld [vmem:[%s1878_s16 + $0x6] sm:$0x1]  ;;  %v1113_v42 = vld [vmem:[%s1878_s16 + $0x7] sm:$0x1]  ;;  %s1574_s16 = sshra.s32 %s1197_s0, 4  ;;  %s1575_s16 = int_to_ptr.hbm [resolvable:$true] %s1574_s16 }
 0x3a1   : > { %v1117_v43 = vmax.f32 %v1109_v41, %v1113_v42  ;;  %s1576_s30 = scalar_lea.hbm %s1575_s16, 32  ;;  %p1581_p1 = scmp.lt.s32.totalorder %s1575_s16, %s1987_s1 }
 0x3a2   : > { %p1577_p9 = scmp.ne.s32.totalorder %s1575_s16, %s1576_s30  ;;  %p1582_p3 = scmp.lt.s32.totalorder %s1580_s28, %s1576_s30 }
 0x3a3   : > { %1128 = vrot.lane.b32.xlu0 %v1117_v43, %s1662_s26 }
 0x3a4   : > { %p1578_p13 = pnand %p1577_p9, %p1753_p11  ;;  %p1583_p4 = por %p1582_p3, %p1581_p1 }
 0x3a6   : > { %p1579_p0 = pneg %p1578_p13 }
 0x3a8   : > { %p1584_p7 = pnand %p1583_p4, %p1579_p0 }
 0x3aa   : > { %1587 = shalt.err (!%p1584_p7)
}
 0x3ab   : > { %s1664_s17 = smov 128   ;;  %s1665_s29 = smov 8  }
 0x3ac   : > { %1472 = dma.vmem_to_hbm [thread:$0]  (%p1753_p11), %s1195_s11, 512, %s1197_s0, %s1160_s3, %s1664_s17, %s1664_s17, %s1665_s29  }
 0x3ad   : > { %s1211_s19 = sshll.u32 %s1845_s20, 4  ;;  %s1213_s13 = sshll.u32 %s1210_s15, 4  ;;  %s1212_s19 = int_to_ptr.vmem [resolvable:$true] %s1211_s19  ;;  %s1214_s13 = int_to_ptr.hbm [resolvable:$true] %s1213_s13 }
 0x3ae   : > { %s1165_s14 = scalar_lea.sflag [#allocation8], %s1789_s18  ;;  %s1602_s25 = sshra.s32 %s1214_s13, 4  ;;  %s1603_s25 = int_to_ptr.hbm [resolvable:$true] %s1602_s25 }
 0x3af   : > { %s1604_s16 = scalar_lea.hbm %s1603_s25, 16  ;;  %s1608_s28 = scalar_lea.hbm %s1988_s2, 32 }
 0x3b0   : > { %p1605_p5 = scmp.ne.s32.totalorder %s1603_s25, %s1604_s16  ;;  %p1609_p2 = scmp.lt.s32.totalorder %s1603_s25, %s1988_s2 }
 0x3b1   : > { %p1610_p6 = scmp.lt.s32.totalorder %s1608_s28, %s1604_s16 }
 0x3b2   : > { %p1606_p8 = pnand %p1605_p5, %p1753_p11 }
 0x3b3   : > { %p1611_p9 = por %p1610_p6, %p1609_p2 }
 0x3b4   : > { %p1607_p10 = pneg %p1606_p8 }
 0x3b6   : > { %p1612_p13 = pnand %p1611_p9, %p1607_p10 }
 0x3b8   : > { %1615 = shalt.err (!%p1612_p13)
}
 0x3b9   : > { %s1666_s0 = smov 64   ;;  %s1667_s3 = smov 4   ;;  %vm1138_vm6 = vcmask 0  }
 0x3ba   : > { %1473 = dma.vmem_to_hbm [thread:$0]  (%p1753_p11), %s1212_s19, 256, %s1214_s13, %s1165_s14, %s1666_s0, %s1666_s0, %s1667_s3  }
 0x3bb   : > { %s321_s15 = scalar_lea.vmem %s1990_s4, %s2010_s7  ;;  %s326_s17 = scalar_lea.vmem %s1991_s5, %s2010_s7 }
 0x3bc   : > { %s331_s13 = scalar_lea.vmem %s1992_s6, %s2010_s7 }
 0x3f5   : > { %v1125_v44 = vpop.permute.xlu2 %1124 }
 0x3f6   : > { %v1135_v48 = vmax.f32 %v1900_v39, %v1125_v44 }
 0x3f8   : > { %1140 = vst.msk [vmem:[%s321_s15 + $0x1] sm:$0x1] %vm1138_vm6, %v1135_v48 }
 0x3ff   : > { %v1127_v45 = vpop.permute.xlu1 %1126  ;;  %v1144_v53 = vld [vmem:[%s321_s15 + $0x1] sm:$0x1] }
 0x400   : > { %v1136_v49 = vmax.f32 %v1895_v35, %v1127_v45  ;;  %1148 = vst.msk [vmem:[%s326_s17 + $0x1] sm:$0x1] %vm1138_vm6, %v1144_v53 }
 0x402   : > { %1141 = vst.msk [vmem:[%s321_s15 + $0x2] sm:$0x1] %vm1138_vm6, %v1136_v49 }
 0x405   : > { %v1123_v46 = vpop.permute.xlu0 %1122 }
 0x406   : > { %v1134_v47 = vmax.f32 %v1114_v40, %v1123_v46 }
 0x407   : > { %v1152_v57 = vld [vmem:[%s326_s17 + $0x1] sm:$0x1] }
 0x408   : > { %1139 = vst.msk [vmem:[%s321_s15] sm:$0x1] %vm1138_vm6, %v1134_v47 }
 0x409   : > { %v1145_v54 = vld [vmem:[%s321_s15 + $0x2] sm:$0x1]  ;;  %1156 = vst.msk [vmem:[%s331_s13 + $0x1] sm:$0x1] %vm1138_vm6, %v1152_v57 }
 0x40a   : > { %1149 = vst.msk [vmem:[%s326_s17 + $0x2] sm:$0x1] %vm1138_vm6, %v1145_v54 }
 0x40f   : > { %v1143_v52 = vld [vmem:[%s321_s15] sm:$0x1] }
 0x410   : > { %1147 = vst.msk [vmem:[%s326_s17] sm:$0x1] %vm1138_vm6, %v1143_v52 }
 0x411   : > { %v1153_v58 = vld [vmem:[%s326_s17 + $0x2] sm:$0x1] }
 0x412   : > { %1157 = vst.msk [vmem:[%s331_s13 + $0x2] sm:$0x1] %vm1138_vm6, %v1153_v58 }
 0x415   : > { %v1129_v50 = vpop.permute.xlu0 %1128 }
 0x416   : > { %v1137_v51 = vmax.f32 %v1117_v43, %v1129_v50 }
 0x417   : > { %v1151_v56 = vld [vmem:[%s326_s17] sm:$0x1] }
 0x418   : > { %1142 = vst.msk [vmem:[%s321_s15 + $0x3] sm:$0x1] %vm1138_vm6, %v1137_v51 }
 0x419   : > { %1155 = vst.msk [vmem:[%s331_s13] sm:$0x1] %vm1138_vm6, %v1151_v56 }
 0x41f   : > { %v1146_v55 = vld [vmem:[%s321_s15 + $0x3] sm:$0x1] }
 0x420   : > { %1150 = vst.msk [vmem:[%s326_s17 + $0x3] sm:$0x1] %vm1138_vm6, %v1146_v55 }
 0x427   : > { %v1154_v59 = vld [vmem:[%s326_s17 + $0x3] sm:$0x1] }
 0x428   : > { %1158 = vst.msk [vmem:[%s331_s13 + $0x3] sm:$0x1] %vm1138_vm6, %v1154_v59 }
 0x429 PF: > { %s1244_s14 = sand.u32 1, %s1646_s21   ;;  %p2003_p11 = scmp.ge.s32.totalorder %s1658_s24, 2 }
 0x42a   : > { %s1245_s7 = scalar_lea.sflag [#allocation5], %s1244_s14 }
 0x42b   : > { %p1481_p0 = pnand %p2003_p11, %p1757_p12 }
 0x42d   : > { %p1482_p1 = pneg %p1481_p0 }
 0x42f   : > { %1637 = dma.done.wait (%p1482_p1), %s1245_s7, 512  }
 0x430   : > { %1639 = vsyncadd (%p1482_p1), %s1245_s7, 4294966784  ;;  %s1255_s25 = scalar_lea.sflag [#allocation8], %s1244_s14 }
 0x431   : > { %1641 = dma.done.wait (%p1482_p1), %s1255_s25, 256  }
 0x432   : > { %1643 = vsyncadd (%p1482_p1), %s1255_s25, 4294967040  ;;  %s2004_s16 = sld [smem:[#allocation12_spill]]  ;;  %p23_p3 = scmp.ge.s32.totalorder %s1728_s27, 4  }
 0x433   : > { %s2005_s21 = smov %s1650_s22  ;;  %s2006_s22 = smov %s1654_s23 }
 0x434   : > { %s2008_s24 = smov %s1728_s27  ;;  %25 = sbr.rel (!%p23_p3) target bundleno = 10 (0xa), region = 165 }
 0x438   : > { %s2007_s23 = smov %s2004_s16 }
 0x439   :  { %1290 = vsyncpa [#allocation4], 1 }
 0x43a   :  { %1292 = vsyncpa [#allocation4 + $0x1], 1 }
 0x43b   :  { %1293 = vsyncpa [#allocation5], 1 }
 0x43c   :  { %1295 = vsyncpa [#allocation5 + $0x1], 1 }
 0x43d   :  { %1296 = vsyncpa [#allocation8], 1 }
 0x43e   :  { %1298 = vsyncpa [#allocation8 + $0x1], 1 }

</bundles_post_ra>
